<compile_context>
chip_gen: v7x
topology: tpu7x:2x2x1
jax: 0.10.0
libtpu: 0.0.40
codegen_flags: <defaults>
</compile_context>

<pallas_src>
import math
from functools import partial

import jax
import jax.numpy as jnp
from jax.experimental import pallas as pl
from jax.experimental.pallas import tpu as pltpu


def _round_up(v: int, m: int) -> int:
    return ((v + m - 1) // m) * m


def _kernel_full(x_ref, g_ref, o_ref):
    # gamma block covers exactly this tile's columns.
    x = x_ref[...].astype(jnp.float32)
    g = g_ref[...].astype(jnp.float32)
    o_ref[...] = (x * g).astype(o_ref.dtype)


def _kernel_dsplit(x_ref, g_ref, o_ref, *, block_d):
    # gamma is VMEM-resident at full width; slice the columns for this tile.
    j = pl.program_id(1)
    off = pl.multiple_of(j * block_d, 128)
    x = x_ref[...].astype(jnp.float32)
    g = g_ref[:, pl.ds(off, block_d)].astype(jnp.float32)
    o_ref[...] = (x * g).astype(o_ref.dtype)


def _tpu_tuning():
    """Returns (target_tile_bytes, vmem_limit_bytes, has_two_tensorcores)."""
    kind = ""
    try:
        kind = jax.devices()[0].device_kind.lower()
    except Exception:
        pass
    if "v7" in kind:
        # 64 MiB VMEM / TC, ~3.2 TB/s HBM, 2 TensorCores per chip.
        return 8 << 20, 40 << 20, True
    if "v6" in kind:
        # 128 MiB VMEM, ~1.4 TB/s HBM.
        return 8 << 20, 64 << 20, False
    # v5e / unknown: conservative tiles; explicit 32 MiB limit is REQUIRED on
    # v5e (default scoped-VMEM limit is 16 MiB).
    return 4 << 20, 32 << 20, False


def _layer_scale_2d(x2d: jax.Array, gamma_flat: jax.Array,
                    out_dtype, donate_x: bool) -> jax.Array:
    """Core pallas_call on a 2D (Mf, Df) view; gamma_flat has shape (Df,)."""
    Mf, Df = x2d.shape
    assert gamma_flat.shape == (Df,)
    gamma2d = gamma_flat.reshape(1, Df)

    target_tile_bytes, vmem_limit, two_cores = _tpu_tuning()

    x_it = jnp.dtype(x2d.dtype).itemsize
    o_it = jnp.dtype(out_dtype).itemsize
    itemsize = max(x_it, o_it)
    # Dtype-aware sublane multiple: 8 for 4-byte, 16 for 2-byte, 32 for 1-byte.
    sub = max(8, 32 // min(x_it, o_it))

    # Column tile: full (folded) D unless even a `sub`-row strip blows the tile
    # budget (only for colossal D).  Only split if the split divides Df exactly
    # so the in-kernel gamma slice never reads out of bounds.
    block_d = Df
    if Df % 128 == 0:
        while block_d > 128 and sub * block_d * itemsize > target_tile_bytes:
            block_d = _round_up(block_d // 2, 128)
        if Df % block_d != 0:
            block_d = Df

    # Row tile: fill the byte budget; the cdiv grid masks the ragged last block.
    block_m = max(sub, (target_tile_bytes // (block_d * itemsize)) // sub * sub)
    if block_m >= Mf:
        if two_cores and Mf >= 2 * sub and Mf % sub == 0:
            # Give v7x's two TensorCores work (>= 2 steps on a parallel axis).
            block_m = max(sub, _round_up(pl.cdiv(Mf, 2), sub))
        else:
            block_m = Mf  # full-dim block (allowed even when Mf % sub != 0)

    grid = (pl.cdiv(Mf, block_m), pl.cdiv(Df, block_d))

    kernel = _kernel_full if block_d == Df else partial(_kernel_dsplit, block_d=block_d)

    bytes_accessed = (
        x2d.size * x_it
        + gamma2d.size * jnp.dtype(gamma2d.dtype).itemsize
        + Mf * Df * o_it
    )

    io_aliases = {}
    if donate_x and jnp.dtype(out_dtype) == x2d.dtype:
        io_aliases = {0: 0}  # reuse x's HBM buffer when the caller donates x

    return pl.pallas_call(
        kernel,
        out_shape=jax.ShapeDtypeStruct((Mf, Df), out_dtype),
        grid_spec=pltpu.PrefetchScalarGridSpec(
            num_scalar_prefetch=0,
            grid=grid,
            in_specs=[
                pl.BlockSpec((block_m, block_d), lambda i, j: (i, j)),
                # gamma: full width, constant index map -> DMA'd once, resident.
                pl.BlockSpec((1, Df), lambda i, j: (0, 0)),
            ],
            out_specs=pl.BlockSpec((block_m, block_d), lambda i, j: (i, j)),
        ),
        compiler_params=pltpu.CompilerParams(
            dimension_semantics=("parallel", "parallel"),
            vmem_limit_bytes=vmem_limit,
        ),
        cost_estimate=pl.CostEstimate(
            flops=Mf * Df, transcendentals=0, bytes_accessed=bytes_accessed
        ),
        input_output_aliases=io_aliases,
    )(x2d, gamma2d)


def layer_scale(x: jax.Array, gamma: jax.Array, *,
                out_dtype=None, donate_x: bool = False) -> jax.Array:
    """x: (..., D), gamma: (D,). Returns (x * gamma) cast to out_dtype.

    out_dtype defaults to x.dtype (bf16 in -> bf16 out; the multiply itself is
    done in f32 in-kernel so gamma precision is preserved).
    """
    orig_shape = x.shape
    D = orig_shape[-1]
    assert gamma.shape == (D,), f"gamma shape {gamma.shape} != ({D},)"
    if out_dtype is None:
        out_dtype = x.dtype
    out_dtype = jnp.dtype(out_dtype)

    x2d = x.reshape(-1, D)
    M = x2d.shape[0]
    if M == 0 or D == 0:
        return jnp.zeros(orig_shape, out_dtype)

    # Lane-dense fold factor: smallest k with (k * D) % 128 == 0.
    k = 1 if D % 128 == 0 else 128 // math.gcd(D, 128)

    if k > 1 and M >= k:
        # Fold the bulk of M (divisible by k) so the kernel sees a last dim
        # that is a multiple of 128 (unmasked, full-width stores).
        M_main = (M // k) * k
        g_fold = jnp.tile(gamma, k)
        main = _layer_scale_2d(
            x2d[:M_main].reshape(M_main // k, k * D), g_fold, out_dtype, donate_x
        ).reshape(M_main, D)
        if M_main < M:
            # Tiny remainder (< k rows): plain XLA multiply, same f32 math.
            rem = (x2d[M_main:].astype(jnp.float32)
                   * gamma.astype(jnp.float32)).astype(out_dtype)
            out2d = jnp.concatenate([main, rem], axis=0)
        else:
            out2d = main
    else:
        # Either already lane-dense, or too few rows to fold (narrow-lane
        # masked stores on a tiny input are negligible).
        out2d = _layer_scale_2d(x2d, gamma, out_dtype, donate_x)

    return out2d.reshape(orig_shape)


if __name__ == "__main__":
    # LayerScale(dim=D) with init_values=1e-5 => gamma = 1e-5 * ones(D)
    B, N, D = 2, 8, 32
    init_values = 1e-5
    key = jax.random.PRNGKey(0)

    # f32 path (matches the PyTorch module exactly).
    x = jax.random.normal(key, (B, N, D), dtype=jnp.float32)
    gamma = init_values * jnp.ones((D,), dtype=jnp.float32)
    y = jax.block_until_ready(layer_scale(x, gamma))
    y_ref = x * gamma
    assert y.shape == x.shape and y.dtype == jnp.float32
    assert jnp.allclose(y, y_ref, atol=1e-7, rtol=1e-6), "f32 mismatch vs reference"

    # bf16 activations: output stays bf16 (half the write traffic), math in f32.
    xb = x.astype(jnp.bfloat16)
    yb = jax.block_until_ready(layer_scale(xb, gamma))
    yb_ref = (xb.astype(jnp.float32) * gamma).astype(jnp.bfloat16)
    assert yb.dtype == jnp.bfloat16
    assert jnp.allclose(yb.astype(jnp.float32), yb_ref.astype(jnp.float32),
                        atol=1e-8, rtol=1e-2), "bf16 mismatch vs reference"

    # Ragged fold path: leading size not divisible by the fold factor k.
    x3 = jax.random.normal(jax.random.PRNGKey(1), (3, 5, D), dtype=jnp.float32)
    y3 = jax.block_until_ready(layer_scale(x3, gamma))
    assert jnp.allclose(y3, x3 * gamma, atol=1e-7, rtol=1e-6), "ragged mismatch"

    print("KERNEL_OK")
</pallas_src>

<mosaic_0001>
module attributes {stable_mosaic.version = 11 : i64} {
  func.func @_kernel_full(%arg0: i32, %arg1: i32, %arg2: memref<4x128xf32, #tpu.memory_space<vmem>>, %arg3: memref<1x128xf32, #tpu.memory_space<vmem>>, %arg4: memref<4x128xf32, #tpu.memory_space<vmem>>) attributes {dimension_semantics = [#tpu.dimension_semantics<parallel>, #tpu.dimension_semantics<parallel>], iteration_bounds = array<i64: 1, 1>, scalar_prefetch = 0 : i64, scratch_operands = 0 : i64, tpu.core_type = #tpu.core_type<tc>, window_params = [{transform_indices = @transform_0, window_bounds = array<i64: 4, 128>}, {pipeline_mode = #tpu.pipeline_mode<synchronous>, transform_indices = @transform_1, window_bounds = array<i64: 1, 128>}, {transform_indices = @transform_2, window_bounds = array<i64: 4, 128>}]} {
    %c0 = arith.constant 0 : index
    %c0_0 = arith.constant 0 : index
    %0 = vector.load %arg2[%c0, %c0_0] : memref<4x128xf32, #tpu.memory_space<vmem>>, vector<4x128xf32>
    %c0_1 = arith.constant 0 : index
    %c0_2 = arith.constant 0 : index
    %1 = vector.load %arg3[%c0_1, %c0_2] : memref<1x128xf32, #tpu.memory_space<vmem>>, vector<1x128xf32>
    %2 = vector.broadcast %1 : vector<1x128xf32> to vector<4x128xf32>
    %3 = arith.mulf %0, %2 : vector<4x128xf32>
    %c0_3 = arith.constant 0 : index
    %c0_4 = arith.constant 0 : index
    %4 = vector.load %arg4[%c0_3, %c0_4] : memref<4x128xf32, #tpu.memory_space<vmem>>, vector<4x128xf32>
    tpu.vector_store %arg4[%c0_3, %c0_4], %3 {strides = array<i32>} : memref<4x128xf32, #tpu.memory_space<vmem>>, vector<4x128xf32>,
    return
  }
  func.func @transform_0(%arg0: i32, %arg1: i32) -> (i32, i32) {
    %c0_i32 = arith.constant 0 : i32
    return %arg0, %arg1 : i32, i32
  }
  func.func @transform_1(%arg0: i32, %arg1: i32) -> (i32, i32) {
    %c0_i32 = arith.constant 0 : i32
    %c0_i32_0 = arith.constant 0 : i32
    %c0_i32_1 = arith.constant 0 : i32
    return %c0_i32, %c0_i32_0 : i32, i32
  }
  func.func @transform_2(%arg0: i32, %arg1: i32) -> (i32, i32) {
    %c0_i32 = arith.constant 0 : i32
    return %arg0, %arg1 : i32, i32
  }
}

</mosaic_0001>

<bundles_post_ra>
// kernel: tpu_custom_call.1
= control target key start
LH: loop header
LB: loop body
LE: loop exit
PB: predicated region body
PF: predicated region fallthrough
CT: control target
= control target key end

     0   :  { %7 = vsyncpa [#allocation3], 0  ;;  %s144_s0 = inlined_call_operand.hbm [shape: f32[4,128], index: 0, kind: input, shape index: {}]   ;;  %s145_s1 = inlined_call_operand.vmem [shape: f32[1,128], index: 1, kind: input, shape index: {}]   ;;  %s146_s2 = inlined_call_operand.hbm [shape: f32[4,128], index: 2, kind: output, shape index: {}]  }
   0x1   :  { %8 = vsyncpa [#allocation4], 0  ;;  %s100_s9 = smov [#allocation2]   ;;  %s52_s13 = scalar_lea.hbm %s144_s0, 64 }
   0x2   :  { %s15_s10 = sshll.u32 %s100_s9, 4  ;;  %p53_p0 = scmp.ne.s32.totalorder %s144_s0, %s52_s13  ;;  %s16_s10 = int_to_ptr.vmem [resolvable:$true] %s15_s10 }
   0x3   :  { %p56_p1 = scmp.lt.u32.totalorder %s52_s13, %s144_s0 }
   0x5   :  { %p58_p2 = pnand %p56_p1, %p53_p0 }
   0x7   :  { %61 = shalt.err (!%p58_p2)
}
   0x8   :  { %s62_s18 = scalar_lea.vmem %s16_s10, 64  ;;  %p67_p4 = scmp.lt.s32.totalorder %s16_s10, %s16_s10 }
   0x9   :  { %p63_p3 = scmp.ne.s32.totalorder %s16_s10, %s62_s18  ;;  %p68_p5 = scmp.lt.s32.totalorder %s62_s18, %s62_s18 }
   0xb   :  { %p69_p6 = por %p68_p5, %p67_p4 }
   0xd   :  { %p70_p7 = pnand %p69_p6, %p63_p3 }
   0xf   :  { %73 = shalt.err (!%p70_p7)
}
  0x10   :  { %18 = dma.hbm_to_vmem [thread:$0]  %s144_s0, 64, %s16_s10, [#allocation3]  }
  0x11   :  { %96 = dma.done.wait [#allocation3], 64  }
  0x12   :  { %97 = vsyncadd [#allocation3], 4294967232  ;;  %s101_s21 = smov [#allocation5]   ;;  %v24_v0 = vld [vmem:[#allocation2] sm:$0xf] }
  0x13   :  { %s40_s22 = sshll.u32 %s101_s21, 4  ;;  %v49_v1 = vld [vmem:[%s145_s1] ss:$0 sm:$0xff]  ;;  %s41_s22 = int_to_ptr.vmem [resolvable:$true] %s40_s22 }
  0x14   :  { %v32_v2 = vmul.f32 %v49_v1, %v24_v0  ;;  %s74_s25 = scalar_lea.vmem %s41_s22, 64  ;;  %p79_p9 = scmp.lt.s32.totalorder %s41_s22, %s41_s22 }
  0x15   :  { %p75_p8 = scmp.ne.s32.totalorder %s41_s22, %s74_s25  ;;  %p80_p10 = scmp.lt.s32.totalorder %s74_s25, %s74_s25 }
  0x16   :  { %33 = vst [vmem:[#allocation5] sm:$0xf] %v32_v2 }
  0x17   :  { %p81_p11 = por %p80_p10, %p79_p9 }
  0x19   :  { %p82_p12 = pnand %p81_p11, %p75_p8 }
  0x1b   :  { %85 = shalt.err (!%p82_p12)
}
  0x1c   :  { %s86_s27 = scalar_lea.hbm %s146_s2, 64 }
  0x1d   :  { %p87_p13 = scmp.ne.s32.totalorder %s146_s2, %s86_s27  ;;  %p90_p0 = scmp.lt.u32.totalorder %s86_s27, %s146_s2 }
  0x1f   :  { %p92_p1 = pnand %p90_p0, %p87_p13 }
  0x21   :  { %95 = shalt.err (!%p92_p1)
}
  0x22   :  { %43 = dma.vmem_to_hbm [thread:$0]  %s41_s22, 64, %s146_s2, [#allocation4]  }
  0x23   :  { %98 = dma.done.wait [#allocation4], 64  }
  0x24   :  { %99 = vsyncadd [#allocation4], 4294967232 }
  0x25   :  { %47 = vsyncpa [#allocation3], 1 }
  0x26   :  { %48 = vsyncpa [#allocation4], 1 }

</bundles_post_ra>
